<compile_context>
chip_gen: v7x
topology: tpu7x:2x2x1
jax: 0.10.0
libtpu: 0.0.40
codegen_flags: <defaults>
</compile_context>

<pallas_src>
import jax
import jax.numpy as jnp
from jax import lax
from jax.experimental import pallas as pl
from jax.experimental.pallas import tpu as pltpu


def _round_up(x, m):
    return ((x + m - 1) // m) * m


def _vmem_capacity_bytes():
    try:
        return int(pltpu.get_tpu_info().vmem_capacity_bytes)
    except Exception:
        return 64 * 1024 * 1024  # conservative fallback (v7x per-TC VMEM)


def _choose_tile_i(i_total, j, rows_block, budget_bytes):
    """Largest multiple-of-128 divisor of i_total whose f32 double-buffered
    dictionary + output columns fit the VMEM budget; forces >=2 blocks when
    i_total >= 512 so megacore parts can split the parallel axis."""
    per_i = 2 * 4 * (j + rows_block)          # dbl-buffered f32 dict col + out col
    fixed = 2 * 4 * rows_block * j            # dbl-buffered f32 activity block
    cap = max((budget_bytes - fixed) // per_i, 128)
    if i_total >= 512:
        cap = min(cap, i_total // 2)
    best = 128
    for cand in range(128, i_total + 1, 128):
        if i_total % cand == 0 and cand <= cap:
            best = cand
    return best


def _recon_kernel(w_ref, d_ref, o_ref):
    # w_ref: (rows, J)   f32 activity tile (streamed on the large-batch path)
    # d_ref: (tile_i, J) f32 dictionary tile (resident across the inner K axis)
    # o_ref: (rows, tile_i) f32 reconstruction tile
    w_b = w_ref[...].astype(jnp.bfloat16)     # VPU cast; MXU-native inputs
    d_b = d_ref[...].astype(jnp.bfloat16)
    # Contract the shared J axis (last dim of both) == w @ d.T, f32 accumulation.
    # TODO(synk): verify in the Mosaic dump that no per-tile XLU transpose is
    # emitted for very large dictionary tiles; if one appears, hoist a one-time
    # wrapper transpose for the large-batch path only.
    o_ref[...] = lax.dot_general(
        w_b, d_b,
        dimension_numbers=(((1,), (1,)), ((), ())),
        preferred_element_type=jnp.float32,
    )


def activity_forward(dictionary, w, batch_size, *, tile_k=None):
    """Pallas equivalent of Activity.forward.

    Args:
        dictionary: (I, J) float32 dictionary.
        w:          (B, J) float32 activity weights (full batch).
        batch_size: number of rows of w to use (static int).
        tile_k:     optional override of the batch tile (testing / tuning).

    Returns:
        (K, I) float32 reconstruction with K = min(batch_size, B), mirroring
        the PyTorch w[:batch_size] slicing semantics.
    """
    I, J = dictionary.shape
    B = w.shape[0]
    # TODO(synk): each distinct static batch_size triggers a recompile; a fully
    # dynamic batch count would need scalar-prefetched lengths instead.
    K = min(int(batch_size), B)

    vmem_cap = _vmem_capacity_bytes()
    budget = min(vmem_cap * 3 // 4, 96 * 1024 * 1024)   # block-VMEM budget
    if tile_k is None:
        # 512-row batch tiles on 128 MiB parts (v5e/v6e), 256 on v7x (64 MiB)
        tile_k = 512 if vmem_cap >= 96 * 1024 * 1024 else 256

    large_batch = K > tile_k
    rows_block = tile_k if large_batch else K

    # ---- dictionary tiling along I (lane axis of the output) ----
    d_in = dictionary
    I_tot = I
    if I % 128 != 0:
        if 2 * 4 * I * J <= budget // 2:
            tile_i = I                        # single full-width block, no padding
        else:
            I_tot = _round_up(I, 128)
            d_in = jnp.pad(dictionary, ((0, I_tot - I), (0, 0)))
            tile_i = _choose_tile_i(I_tot, J, rows_block, budget)
    else:
        tile_i = _choose_tile_i(I, J, rows_block, budget)

    # ---- activity rows ----
    if large_batch:
        K_pad = _round_up(K, tile_k)
        if K_pad <= B:
            w_in = w                          # real rows already cover the padded range
        else:
            w_in = jnp.pad(w[:K], ((0, K_pad - K), (0, 0)))
        out_rows = K_pad
        # I outer, K inner: dictionary tile resident across the inner axis,
        # small activity tiles stream, each output block written once.
        grid = (I_tot // tile_i, K_pad // tile_k)
        in_specs = [
            pl.BlockSpec((tile_k, J), lambda i, k: (k, 0)),
            pl.BlockSpec((tile_i, J), lambda i, k: (i, 0)),
        ]
        out_specs = pl.BlockSpec((tile_k, tile_i), lambda i, k: (k, i))
        dims = ("parallel", "parallel")
    else:
        # Small-batch path (shipped K=8): whole activity block stays resident.
        if K == B or K % 8 == 0:
            w_in = w                          # block (K, J) at row-block 0 == w[:K]
        else:
            w_in = w[:K]
        out_rows = K
        grid = (I_tot // tile_i,)
        in_specs = [
            pl.BlockSpec((K, J), lambda i: (0, 0)),
            pl.BlockSpec((tile_i, J), lambda i: (i, 0)),
        ]
        out_specs = pl.BlockSpec((K, tile_i), lambda i: (0, i))
        dims = ("parallel",)

    needed = 2 * 4 * (rows_block * J + tile_i * J + rows_block * tile_i)
    vmem_limit = int(min(max(32 * 1024 * 1024, 2 * needed), budget))

    cost = pl.CostEstimate(
        flops=2 * out_rows * I_tot * J,
        transcendentals=0,
        bytes_accessed=4 * (out_rows * J + I_tot * J + out_rows * I_tot),
    )

    out = pl.pallas_call(
        _recon_kernel,
        out_shape=jax.ShapeDtypeStruct((out_rows, I_tot), jnp.float32),
        grid_spec=pl.GridSpec(grid=grid, in_specs=in_specs, out_specs=out_specs),
        compiler_params=pltpu.CompilerParams(
            dimension_semantics=dims,
            vmem_limit_bytes=vmem_limit,
        ),
        cost_estimate=cost,
    )(w_in, d_in)

    if out_rows != K or I_tot != I:
        out = out[:K, :I]
    return out


class ActivityJax:
    """Minimal JAX mirror of the PyTorch Activity module (forward path only)."""

    def __init__(self, units, batch_size, alpha, sparsity_coef, key):
        self.units = units
        self.batch_size = batch_size
        self.rate = alpha
        self.sparsity_coef = sparsity_coef
        # deterministic stand-in for torch.randn(batch_size, units)
        self.w = jax.random.normal(key, (batch_size, units), dtype=jnp.float32)

    def forward(self, dictionary, batch_size):
        return activity_forward(dictionary, self.w, batch_size)


if __name__ == "__main__":
    key = jax.random.PRNGKey(0)
    k_w, k_d, k_w2, k_d2 = jax.random.split(key, 4)

    # Shipped-style config (small-batch path; pallas_call is the only op).
    units, batch_size, input_dim = 128, 8, 256
    act = ActivityJax(units, batch_size, alpha=0.01, sparsity_coef=0.1, key=k_w)
    dictionary = jax.random.normal(k_d, (input_dim, units), dtype=jnp.float32)

    out = jax.block_until_ready(act.forward(dictionary, batch_size))
    assert out.shape == (batch_size, input_dim)

    # Tight check vs a bf16-rounded-input reference (same quantization, f32 acc).
    ref_bf16 = jnp.einsum(
        "ij,kj->ki",
        dictionary.astype(jnp.bfloat16).astype(jnp.float32),
        act.w[:batch_size].astype(jnp.bfloat16).astype(jnp.float32),
    )
    assert jnp.allclose(out, ref_bf16, atol=1e-2, rtol=1e-2)
    # Loose sanity check vs the exact f32 reference (bf16 input rounding noise).
    ref_f32 = jnp.einsum("ij,kj->ki", dictionary, act.w[:batch_size])
    assert jnp.allclose(out, ref_f32, atol=5e-1, rtol=5e-2)

    # Exercise the large-batch path (I outer / K inner, resident dictionary).
    K2, J2, I2 = 96, 128, 512
    w2 = jax.random.normal(k_w2, (K2, J2), dtype=jnp.float32)
    d2 = jax.random.normal(k_d2, (I2, J2), dtype=jnp.float32)
    out2 = jax.block_until_ready(activity_forward(d2, w2, K2, tile_k=32))
    assert out2.shape == (K2, I2)
    ref2_bf16 = jnp.einsum(
        "ij,kj->ki",
        d2.astype(jnp.bfloat16).astype(jnp.float32),
        w2.astype(jnp.bfloat16).astype(jnp.float32),
    )
    assert jnp.allclose(out2, ref2_bf16, atol=1e-2, rtol=1e-2)
    assert jnp.allclose(out2, jnp.einsum("ij,kj->ki", d2, w2), atol=5e-1, rtol=5e-2)

    print("KERNEL_OK")
</pallas_src>

<mosaic_0001>
module attributes {stable_mosaic.version = 11 : i64} {
  func.func @_recon_kernel(%arg0: i32, %arg1: memref<8x128xf32, #tpu.memory_space<vmem>>, %arg2: memref<256x128xf32, #tpu.memory_space<vmem>>, %arg3: memref<8x256xf32, #tpu.memory_space<vmem>>) attributes {dimension_semantics = [#tpu.dimension_semantics<parallel>], iteration_bounds = array<i64: 1>, scalar_prefetch = 0 : i64, scratch_operands = 0 : i64, tpu.core_type = #tpu.core_type<tc>, window_params = [{pipeline_mode = #tpu.pipeline_mode<synchronous>, transform_indices = @transform_0, window_bounds = array<i64: 8, 128>}, {transform_indices = @transform_1, window_bounds = array<i64: 256, 128>}, {transform_indices = @transform_2, window_bounds = array<i64: 8, 256>}]} {
    %c0 = arith.constant 0 : index
    %c0_0 = arith.constant 0 : index
    %0 = vector.load %arg1[%c0, %c0_0] : memref<8x128xf32, #tpu.memory_space<vmem>>, vector<8x128xf32>
    %1 = arith.truncf %0 : vector<8x128xf32> to vector<8x128xbf16>
    %c0_1 = arith.constant 0 : index
    %c0_2 = arith.constant 0 : index
    %2 = vector.load %arg2[%c0_1, %c0_2] : memref<256x128xf32, #tpu.memory_space<vmem>>, vector<256x128xf32>
    %3 = arith.truncf %2 : vector<256x128xf32> to vector<256x128xbf16>
    %cst = arith.constant dense<0.000000e+00> : vector<8x256xf32>
    %4 = tpu.matmul %1, %3, %cst {dimension_numbers = #tpu.dot_dimension_numbers<[1], [1], [0], [0], [0, 0, 1, 0], [], []>} : vector<8x128xbf16>, vector<256x128xbf16>, vector<8x256xf32> -> vector<8x256xf32>
    %c0_3 = arith.constant 0 : index
    %c0_4 = arith.constant 0 : index
    %5 = vector.load %arg3[%c0_3, %c0_4] : memref<8x256xf32, #tpu.memory_space<vmem>>, vector<8x256xf32>
    tpu.vector_store %arg3[%c0_3, %c0_4], %4 {strides = array<i32>} : memref<8x256xf32, #tpu.memory_space<vmem>>, vector<8x256xf32>,
    return
  }
  func.func @transform_0(%arg0: i32) -> (i32, i32) {
    %c0_i32 = arith.constant 0 : i32
    %c0_i32_0 = arith.constant 0 : i32
    %c0_i32_1 = arith.constant 0 : i32
    return %c0_i32, %c0_i32_0 : i32, i32
  }
  func.func @transform_1(%arg0: i32) -> (i32, i32) {
    %c0_i32 = arith.constant 0 : i32
    %c0_i32_0 = arith.constant 0 : i32
    return %arg0, %c0_i32 : i32, i32
  }
  func.func @transform_2(%arg0: i32) -> (i32, i32) {
    %c0_i32 = arith.constant 0 : i32
    %c0_i32_0 = arith.constant 0 : i32
    return %c0_i32, %arg0 : i32, i32
  }
}

</mosaic_0001>

<bundles_post_ra>
// kernel: tpu_custom_call.1
= control target key start
LH: loop header
LB: loop body
LE: loop exit
PB: predicated region body
PF: predicated region fallthrough
CT: control target
= control target key end

     0   :  { %7 = vsyncpa [#allocation3], 0  ;;  %s306_s0 = inlined_call_operand.hbm [shape: f32[8,128], index: 0, kind: input, shape index: {}]   ;;  %s307_s1 = inlined_call_operand.hbm [shape: f32[256,128], index: 1, kind: input, shape index: {}]   ;;  %s308_s2 = inlined_call_operand.hbm [shape: f32[8,256], index: 2, kind: output, shape index: {}]  }
   0x1   :  { %8 = vsyncpa [#allocation6], 0 }
   0x2   :  { %9 = vsyncpa [#allocation4], 0  ;;  %s243_s9 = smov [#allocation2]   ;;  %s244_s11 = smov [#allocation5]  }
   0x3   :  { %s16_s10 = sshll.u32 %s243_s9, 4  ;;  %s25_s12 = sshll.u32 %s244_s11, 4  ;;  %s17_s10 = int_to_ptr.vmem [resolvable:$true] %s16_s10  ;;  %s263_s12 = int_to_ptr.vmem [resolvable:$true] %s25_s12 }
   0x4   :  { %s171_s15 = scalar_lea.hbm %s306_s0, 128 }
   0x5   :  { %p172_p0 = scmp.ne.s32.totalorder %s306_s0, %s171_s15  ;;  %p175_p1 = scmp.lt.u32.totalorder %s171_s15, %s306_s0 }
   0x7   :  { %p177_p2 = pnand %p175_p1, %p172_p0 }
   0x9   :  { %180 = shalt.err (!%p177_p2)
}
   0xa   :  { %s181_s20 = scalar_lea.vmem %s17_s10, 128  ;;  %p186_p4 = scmp.lt.s32.totalorder %s17_s10, %s17_s10 }
   0xb   :  { %p182_p3 = scmp.ne.s32.totalorder %s17_s10, %s181_s20  ;;  %p187_p5 = scmp.lt.s32.totalorder %s181_s20, %s181_s20 }
   0xd   :  { %p188_p6 = por %p187_p5, %p186_p4 }
   0xf   :  { %p189_p7 = pnand %p188_p6, %p182_p3 }
  0x11   :  { %192 = shalt.err (!%p189_p7)
}
  0x12   :  { %19 = dma.hbm_to_vmem [thread:$0]  %s306_s0, 128, %s17_s10, [#allocation3]  }
  0x13   :  { %s193_s25 = scalar_lea.hbm %s307_s1, 4096 }
  0x14   :  { %p194_p8 = scmp.ne.s32.totalorder %s307_s1, %s193_s25  ;;  %p197_p9 = scmp.lt.u32.totalorder %s193_s25, %s307_s1 }
  0x16   :  { %p199_p10 = pnand %p197_p9, %p194_p8 }
  0x18   :  { %202 = shalt.err (!%p199_p10)
}
  0x19   :  { %s203_s30 = scalar_lea.vmem %s263_s12, 4096  ;;  %p208_p12 = scmp.lt.s32.totalorder %s263_s12, %s263_s12 }
  0x1a   :  { %p204_p11 = scmp.ne.s32.totalorder %s263_s12, %s203_s30  ;;  %p209_p13 = scmp.lt.s32.totalorder %s203_s30, %s203_s30 }
  0x1c   :  { %p210_p0 = por %p209_p13, %p208_p12 }
  0x1e   :  { %p211_p1 = pnand %p210_p0, %p204_p11 }
  0x20   :  { %214 = shalt.err (!%p211_p1)
}
  0x21   :  { %s245_s0 = smov 128   ;;  %s246_s3 = smov 8  }
  0x22   :  { %31 = dma.hbm_to_vmem [thread:$0]  %s307_s1, 4096, %s263_s12, [#allocation6], %s245_s0, %s245_s0, %s246_s3  }
  0x23   :  { %237 = dma.done.wait [#allocation3], 128  }
  0x24   :  { %238 = vsyncadd [#allocation3], 4294967168 }
  0x25   :  { %239 = dma.done.wait [#allocation6], 4096  }
  0x26   :  { %240 = vsyncadd [#allocation6], 4294963200  ;;  %v57_v0 = vld [vmem:[#allocation5 + $0x80] sm:$0xff]  ;;  %v58_v1 = vld [vmem:[#allocation5 + $0x88] sm:$0xff]  ;;  %s247_s1 = smov [#allocation7]  }
  0x27   :  { %v41_v2 = vld [vmem:[#allocation5] sm:$0xff]  ;;  %v81_v3 = vpack.c.bf16 %v58_v1, %v57_v0  ;;  %v42_v4 = vld [vmem:[#allocation5 + $0x8] sm:$0xff]  ;;  %v59_v5 = vld [vmem:[#allocation5 + $0x90] sm:$0xff]  ;;  %s138_s6 = sshll.u32 %s247_s1, 4  ;;  %s139_s6 = int_to_ptr.vmem [resolvable:$true] %s138_s6 }
  0x28   :  { %v60_v6 = vld [vmem:[#allocation5 + $0x98] sm:$0xff]  ;;  %v73_v7 = vpack.c.bf16 %v42_v4, %v41_v2  ;;  %v43_v9 = vld [vmem:[#allocation5 + $0x10] sm:$0xff]  ;;  %v61_v11 = vld [vmem:[#allocation5 + $0xa0] sm:$0xff]  ;;  %s215_s7 = scalar_lea.vmem %s139_s6, 256  ;;  %p220_p3 = scmp.lt.s32.totalorder %s139_s6, %s139_s6 }
  0x29   :  { %v82_v8 = vpack.c.bf16 %v60_v6, %v59_v5  ;;  %148 = vmatprep.subr.bf16.mxu0 %v81_v3  ;;  %v44_v10 = vld [vmem:[#allocation5 + $0x18] sm:$0xff]  ;;  %v62_v12 = vld [vmem:[#allocation5 + $0xa8] sm:$0xff]  ;;  %v45_v17 = vld [vmem:[#allocation5 + $0x20] sm:$0xff]  ;;  %p216_p2 = scmp.ne.s32.totalorder %s139_s6, %s215_s7  ;;  %p221_p4 = scmp.lt.s32.totalorder %s215_s7, %s215_s7 }
  0x2a   :  { %149 = vmatpush3.bf16.xpose.msra.mxu0 %v73_v7  ;;  %v74_v13 = vpack.c.bf16 %v44_v10, %v43_v9  ;;  %v83_v14 = vpack.c.bf16 %v62_v12, %v61_v11  ;;  %v39_v15 = vld [vmem:[#allocation2] sm:$0xff]  ;;  %v46_v18 = vld [vmem:[#allocation5 + $0x28] sm:$0xff]  ;;  %v63_v19 = vld [vmem:[#allocation5 + $0xb0] sm:$0xff] }
  0x2b   :  { %150 = vmatprep.subr.bf16.mxu0 %v82_v8  ;;  %v40_v16 = vpack.c.bf16 %v39_v15, %v39_v15  ;;  %v64_v20 = vld [vmem:[#allocation5 + $0xb8] sm:$0xff]  ;;  %v75_v21 = vpack.c.bf16 %v46_v18, %v45_v17  ;;  %v47_v23 = vld [vmem:[#allocation5 + $0x30] sm:$0xff]  ;;  %v65_v25 = vld [vmem:[#allocation5 + $0xc0] sm:$0xff]  ;;  %p222_p5 = por %p221_p4, %p220_p3 }
  0x2c   :  { %v84_v22 = vpack.c.bf16 %v64_v20, %v63_v19  ;;  %v48_v24 = vld [vmem:[#allocation5 + $0x38] sm:$0xff]  ;;  %v66_v26 = vld [vmem:[#allocation5 + $0xc8] sm:$0xff]  ;;  %v49_v29 = vld [vmem:[#allocation5 + $0x40] sm:$0xff] }
  0x2d   :  { %164 = vmatprep.mubr.bf16.mxu0 %v40_v16  ;;  %v76_v27 = vpack.c.bf16 %v48_v24, %v47_v23  ;;  %v85_v28 = vpack.c.bf16 %v66_v26, %v65_v25  ;;  %v50_v30 = vld [vmem:[#allocation5 + $0x48] sm:$0xff]  ;;  %v67_v31 = vld [vmem:[#allocation5 + $0xd0] sm:$0xff]  ;;  %v68_v32 = vld [vmem:[#allocation5 + $0xd8] sm:$0xff]  ;;  %p223_p6 = pnand %p222_p5, %p216_p2 }
  0x2e   :  { %v77_v33 = vpack.c.bf16 %v50_v30, %v49_v29  ;;  %v86_v34 = vpack.c.bf16 %v68_v32, %v67_v31  ;;  %v51_v35 = vld [vmem:[#allocation5 + $0x50] sm:$0xff]  ;;  %v52_v36 = vld [vmem:[#allocation5 + $0x58] sm:$0xff]  ;;  %v69_v37 = vld [vmem:[#allocation5 + $0xe0] sm:$0xff] }
  0x2f   :  { %v70_v38 = vld [vmem:[#allocation5 + $0xe8] sm:$0xff]  ;;  %v78_v39 = vpack.c.bf16 %v52_v36, %v51_v35  ;;  %v53_v41 = vld [vmem:[#allocation5 + $0x60] sm:$0xff]  ;;  %v71_v43 = vld [vmem:[#allocation5 + $0xf0] sm:$0xff] }
  0x30   :  { %v87_v40 = vpack.c.bf16 %v70_v38, %v69_v37  ;;  %v54_v42 = vld [vmem:[#allocation5 + $0x68] sm:$0xff]  ;;  %v72_v44 = vld [vmem:[#allocation5 + $0xf8] sm:$0xff]  ;;  %v55_v47 = vld [vmem:[#allocation5 + $0x70] sm:$0xff] }
  0x31   :  { %v79_v45 = vpack.c.bf16 %v54_v42, %v53_v41  ;;  %v88_v46 = vpack.c.bf16 %v72_v44, %v71_v43  ;;  %v56_v48 = vld [vmem:[#allocation5 + $0x78] sm:$0xff] }
  0x32   :  { %151 = vmatpush3.bf16.xpose.msra.mxu0 %v74_v13  ;;  %v80_v49 = vpack.c.bf16 %v56_v48, %v55_v47 }
  0x33   :  { %152 = vmatprep.subr.bf16.mxu0 %v83_v14 }
  0x3a   :  { %153 = vmatpush3.bf16.xpose.msra.mxu0 %v75_v21 }
  0x3b   :  { %154 = vmatprep.subr.bf16.mxu0 %v84_v22 }
  0x42   :  { %155 = vmatpush3.bf16.xpose.msra.mxu0 %v76_v27 }
  0x43   :  { %156 = vmatprep.subr.bf16.mxu0 %v85_v28 }
  0x4a   :  { %157 = vmatpush3.bf16.xpose.msra.mxu0 %v77_v33 }
  0x4b   :  { %158 = vmatprep.subr.bf16.mxu0 %v86_v34 }
  0x52   :  { %159 = vmatpush3.bf16.xpose.msra.mxu0 %v78_v39 }
  0x53   :  { %160 = vmatprep.subr.bf16.mxu0 %v87_v40 }
  0x5a   :  { %161 = vmatpush3.bf16.xpose.msra.mxu0 %v79_v45 }
  0x5b   :  { %162 = vmatprep.subr.bf16.mxu0 %v88_v46 }
  0x62   :  { %163 = vmatpush3.bf16.xpose.msra.mxu0 %v80_v49 }
  0x69   :  { %165 = vmatmul.mubr.bf16.vlgmr.msra.gmra.mrb[0].mxu0 %v40_v16 }
 0x13c   :  { %v123_v50 = vpop.f32.mrb[0].mxu0 }
 0x13d   :  { %130 = vst [vmem:[#allocation7] sm:$0xff] %v123_v50  ;;  %v125_v51 = vpop.f32.mrb[1].mxu0 }
 0x13e   :  { %131 = vst [vmem:[#allocation7 + $0x8] sm:$0xff] %v125_v51  ;;  %v127_v52 = vpop.f32.mrb[2].mxu0 }
 0x13f   :  { %v128_v53 = vpop.f32.mrb[3].mxu0 }
 0x140   :  { %226 = shalt.err (!%p223_p6)
}
 0x141   :  { %s227_s10 = scalar_lea.hbm %s308_s2, 256 }
 0x142   :  { %p228_p7 = scmp.ne.s32.totalorder %s308_s2, %s227_s10  ;;  %p231_p8 = scmp.lt.u32.totalorder %s227_s10, %s308_s2 }
 0x144   :  { %p233_p9 = pnand %p231_p8, %p228_p7 }
 0x146   :  { %236 = shalt.err (!%p233_p9)
}
 0x147   :  { %141 = dma.vmem_to_hbm [thread:$0]  %s139_s6, 256, %s308_s2, [#allocation4]  }
 0x148   :  { %241 = dma.done.wait [#allocation4], 256  }
 0x149   :  { %242 = vsyncadd [#allocation4], 4294967040 }
 0x14a   :  { %145 = vsyncpa [#allocation3], 1 }
 0x14b   :  { %146 = vsyncpa [#allocation6], 1 }
 0x14c   :  { %147 = vsyncpa [#allocation4], 1 }

</bundles_post_ra>
